<compile_context>
chip_gen: v7x
topology: tpu7x:2x2x1
jax: 0.10.0
libtpu: 0.0.40
codegen_flags: <defaults>
</compile_context>

<pallas_src>
import functools

import jax
import jax.numpy as jnp
from jax.experimental import pallas as pl
from jax.experimental.pallas import tpu as pltpu


def get_padding(kernel_size: int, dilation: int) -> int:
    return dilation * (kernel_size - 1) // 2


def _round_up(v: int, m: int) -> int:
    return (v + m - 1) // m * m


def _downsample_kernel(x_ref, scale_ref, shift_ref, w_ref, b_ref, o_ref,
                       flat_ref, *im2col_scratch, c, hp, wp, wpp, k, dil,
                       pad, halo, use_im2col):
    """One (batch, cout-tile) grid step.

    x_ref     : (1, c, hp*wpp) f32    pooled input, lane-dense, W junk-padded
    scale_ref : (c, 1) f32            folded BN scale
    shift_ref : (c, 1) f32            folded BN shift
    w_ref     : (cout_t, k*k*c) bf16  conv weights, tap-major columns
    b_ref     : (cout_t, 1) f32       conv bias
    o_ref     : (1, cout_t, hp*wpp)   output (garbage in the 2*pad pad cols)
    flat_ref  : (c, halo + hp*wpp + halo) bf16   zero halos = H zero-pad
    im2col    : (k*k*c, hp*wpp) bf16  only present when use_im2col
    """
    lp = hp * wpp
    base = halo - pad * (wpp + 1)   # flat column holding A_flat[0] (top-left pad)
    j = pl.program_id(1)

    # Activation prep runs once per batch element (j == 0); the Cout-tile axis
    # is "arbitrary"/innermost so the bf16 flat scratch persists across it.
    @pl.when(j == 0)
    def _prep():
        # BatchNorm (inference, folded scale/shift) + ReLU: f32 on the VPU.
        act = jnp.maximum(x_ref[0] * scale_ref[...] + shift_ref[...], 0.0)
        if pad > 0:
            # Zero the W pad columns (junk-padded by the wrapper); they land
            # exactly on the left/right zero-pad positions of the padded-width
            # layout.  ONE select instead of 6 per-tap border selects.
            col = jax.lax.broadcasted_iota(jnp.int32, (1, lp), 1) % wpp
            act = jnp.where(col < wp, act, 0.0)
        # Single f32 -> bf16 cast, single contiguous (128-aligned) store.
        flat_ref[:, halo:halo + lp] = act.astype(flat_ref.dtype)
        if halo > 0:
            # Zero halos provide the top/bottom zero-pad rows; re-done each
            # batch step because the batch axis is megacore-parallel.
            zeros = jnp.zeros((c, halo), flat_ref.dtype)
            flat_ref[:, 0:halo] = zeros
            flat_ref[:, halo + lp:halo + lp + halo] = zeros
        if use_im2col:
            # Materialized im2col: each tap is a pure bf16 lane-offset copy
            # (no masks, no casts).
            im2col_ref = im2col_scratch[0]
            for t in range(k * k):
                ti, tj = divmod(t, k)
                start = base + ti * dil * wpp + tj * dil
                im2col_ref[t * c:(t + 1) * c, :] = flat_ref[:, start:start + lp]

    if use_im2col:
        # One big-K MXU matmul (cout_t, k*k*c) @ (k*k*c, lp), f32 accumulate.
        res = jnp.dot(w_ref[...], im2col_scratch[0][...],
                      preferred_element_type=jnp.float32)
    else:
        # Large C: skip the materialized im2col entirely; accumulate per-tap
        # matmuls straight from the bf16 flat windows.
        res = jnp.zeros((w_ref.shape[0], lp), jnp.float32)
        for t in range(k * k):
            ti, tj = divmod(t, k)
            start = base + ti * dil * wpp + tj * dil
            res = res + jnp.dot(w_ref[:, t * c:(t + 1) * c],
                                flat_ref[:, start:start + lp],
                                preferred_element_type=jnp.float32)

    o_ref[0] = (res + b_ref[...]).astype(o_ref.dtype)


def preactivation_pool_downsample(x, gamma, beta, running_mean, running_var,
                                  conv_w, conv_b, *, stride=2, kernel_size=3,
                                  dilation=1, eps=1e-5):
    """x: (N, C, H, W) float32 (NCHW).  Returns (N, Cout, H//stride, W//stride).

    Inference-mode BatchNorm + zero padding (the module defaults).
    Note: the conv matmul uses bf16 inputs with f32 accumulation on the MXU.
    """
    n, c, h, w = x.shape
    s = stride
    assert h % s == 0 and w % s == 0, "spatial dims must be divisible by stride"
    assert kernel_size % 2 == 1, "odd conv kernel expected (same-size conv)"
    k = kernel_size
    pad = get_padding(k, dilation)
    hp, wp = h // s, w // s
    wpp = wp + 2 * pad          # padded conv width: taps become pure lane offsets
    lp = hp * wpp
    cout = conv_w.shape[0]

    # --- MaxPool2d(stride, stride): fused strided-window-max prepass writing
    #     only the 1/s^2-sized pooled tensor. --------------------------------
    pooled = jax.lax.reduce_window(
        x, -jnp.inf, jax.lax.max,
        window_dimensions=(1, 1, s, s), window_strides=(1, 1, s, s),
        padding="VALID")

    # --- fold BN (inference) into per-channel scale/shift -------------------
    inv_std = jax.lax.rsqrt(running_var + eps)
    scale_1d = (gamma * inv_std).astype(jnp.float32)
    shift_1d = (beta - running_mean * gamma * inv_std).astype(jnp.float32)

    # --- pad channels to a multiple of 16 (bf16 sublane tile); padded
    #     channels get zero scale/shift and zero weights. --------------------
    c_p = _round_up(c, 16)
    scale = jnp.pad(scale_1d, (0, c_p - c)).reshape(c_p, 1)   # (C,1): dense packing
    shift = jnp.pad(shift_1d, (0, c_p - c)).reshape(c_p, 1)

    # --- lane-dense input: pad W with 2*pad junk columns (zeroed in-kernel)
    #     and flatten to (N, C, Hp*Wpp) (contiguous row-major reshape). ------
    pooled = jnp.pad(pooled, ((0, 0), (0, c_p - c), (0, 0), (0, 2 * pad)))
    pooled_flat = pooled.reshape(n, c_p, lp)

    # --- Cout tiling: <=256 output channels per grid step -------------------
    cout_tile = cout if cout <= 256 else 256
    cout_p = _round_up(cout, cout_tile)
    n_j = cout_p // cout_tile

    conv_w_p = jnp.pad(conv_w,
                       ((0, cout_p - cout), (0, c_p - c), (0, 0), (0, 0)))
    conv_b_p = jnp.pad(conv_b, (0, cout_p - cout))
    # (Cout, k*k*C) tap-major weight matrix: column (i*k + j)*C + ch.
    w2 = jnp.transpose(conv_w_p, (0, 2, 3, 1)).reshape(cout_p, k * k * c_p)
    w2 = w2.astype(jnp.bfloat16)
    b2 = conv_b_p.reshape(cout_p, 1).astype(jnp.float32)

    # Halo: >= pad*(Wpp+1) (top pad rows + left pad of first valid row),
    # rounded to 128 lanes so the activation store is lane-aligned.
    halo = _round_up(pad * (wpp + 1), 128) if pad > 0 else 0

    # Big-K im2col matmul for small C; per-tap accumulation for large C
    # (threshold 256; on v5e >=128 already fills the MXU K-tile).
    use_im2col = c_p < 256

    kernel = functools.partial(
        _downsample_kernel, c=c_p, hp=hp, wp=wp, wpp=wpp, k=k, dil=dilation,
        pad=pad, halo=halo, use_im2col=use_im2col)

    # --- VMEM budget: size the limit to the working set (never the whole
    #     64 MiB of v7x); guard against shapes that need Hp tiling. ----------
    in_blk = c_p * lp * 4
    out_blk = cout_tile * lp * 4
    flat_b = c_p * (lp + 2 * halo) * 2
    im2col_b = (k * k * c_p) * lp * 2 if use_im2col else 0
    w_b = cout_tile * (k * k * c_p) * 2
    vmem_est = (2 * in_blk + 2 * out_blk + flat_b + im2col_b + 2 * w_b
                + 4 * (c_p + cout_tile) * 4)
    assert vmem_est <= 44 * 1024 * 1024, (
        "working set too large for a single (batch, cout-tile) block; "
        "TODO(synk): add an Hp-tile grid axis with pad-row halos")
    vmem_limit = min(max(2 * vmem_est, 16 * 1024 * 1024), 48 * 1024 * 1024)

    def _run(single_buffer_consts):
        const_kw = ({"pipeline_mode": pl.Buffered(1)}
                    if single_buffer_consts else {})
        # Weights/bias are grid-invariant only when there is a single Cout tile.
        w_kw = const_kw if n_j == 1 else {}
        in_specs = [
            pl.BlockSpec((1, c_p, lp), lambda b, j: (b, 0, 0)),
            pl.BlockSpec((c_p, 1), lambda b, j: (0, 0), **const_kw),
            pl.BlockSpec((c_p, 1), lambda b, j: (0, 0), **const_kw),
            pl.BlockSpec((cout_tile, k * k * c_p), lambda b, j: (j, 0), **w_kw),
            pl.BlockSpec((cout_tile, 1), lambda b, j: (j, 0), **w_kw),
        ]
        out_specs = pl.BlockSpec((1, cout_tile, lp), lambda b, j: (b, j, 0))
        scratch = [pltpu.VMEM((c_p, lp + 2 * halo), jnp.bfloat16)]
        if use_im2col:
            scratch.append(pltpu.VMEM((k * k * c_p, lp), jnp.bfloat16))
        return pl.pallas_call(
            kernel,
            out_shape=jax.ShapeDtypeStruct((n, cout_p, lp), x.dtype),
            grid_spec=pltpu.PrefetchScalarGridSpec(
                num_scalar_prefetch=0,
                grid=(n, n_j),
                in_specs=in_specs,
                out_specs=out_specs,
                scratch_shapes=scratch),
            compiler_params=pltpu.CompilerParams(
                dimension_semantics=("parallel", "arbitrary"),
                vmem_limit_bytes=vmem_limit),
        )(pooled_flat, scale, shift, w2, b2)

    try:
        out_flat = _run(single_buffer_consts=True)
    except Exception:
        # pl.Buffered(1) not supported by this JAX -> default double buffering.
        out_flat = _run(single_buffer_consts=False)

    out = out_flat.reshape(n, cout_p, hp, wpp)
    return out[:, :cout, :, :wp]


def _reference(x, gamma, beta, rmean, rvar, conv_w, conv_b, *, stride, pad,
               dilation, eps=1e-5):
    n, c, h, w = x.shape
    hp, wp = h // stride, w // stride
    pooled = x.reshape(n, c, hp, stride, wp, stride).max(axis=(3, 5))
    bn = (pooled - rmean[None, :, None, None]) / jnp.sqrt(
        rvar[None, :, None, None] + eps)
    bn = bn * gamma[None, :, None, None] + beta[None, :, None, None]
    act = jnp.maximum(bn, 0.0)
    act_p = jnp.pad(act, ((0, 0), (0, 0), (pad, pad), (pad, pad)))
    out = jax.lax.conv_general_dilated(
        act_p, conv_w, window_strides=(1, 1), padding="VALID",
        rhs_dilation=(dilation, dilation),
        dimension_numbers=("NCHW", "OIHW", "NCHW"))
    return out + conv_b[None, :, None, None]


if __name__ == "__main__":
    N, C_IN, C_OUT, H, W = 2, 4, 8, 16, 16
    STRIDE, KSIZE, DIL = 2, 3, 1

    key = jax.random.PRNGKey(0)
    kx, kw_, kb_ = jax.random.split(key, 3)

    x = jax.random.normal(kx, (N, C_IN, H, W), dtype=jnp.float32)

    # Deterministic parameter init (synthetic, matches PyTorch shapes):
    #   BatchNorm2d(C_IN): weight, bias, running_mean, running_var -> (C_IN,)
    #   Conv2d(C_IN, C_OUT, k=3): weight (C_OUT, C_IN, 3, 3), bias (C_OUT,)
    gamma = 1.0 + 0.1 * jnp.arange(C_IN, dtype=jnp.float32)
    beta = 0.05 * jnp.arange(C_IN, dtype=jnp.float32)
    running_mean = 0.02 * jnp.arange(C_IN, dtype=jnp.float32)
    running_var = 1.0 + 0.03 * jnp.arange(C_IN, dtype=jnp.float32)
    conv_w = 0.1 * jax.random.normal(kw_, (C_OUT, C_IN, KSIZE, KSIZE),
                                     dtype=jnp.float32)
    conv_b = 0.01 * jax.random.normal(kb_, (C_OUT,), dtype=jnp.float32)

    out = preactivation_pool_downsample(
        x, gamma, beta, running_mean, running_var, conv_w, conv_b,
        stride=STRIDE, kernel_size=KSIZE, dilation=DIL)
    out = jax.block_until_ready(out)

    assert out.shape == (N, C_OUT, H // STRIDE, W // STRIDE), out.shape

    ref = _reference(x, gamma, beta, running_mean, running_var, conv_w, conv_b,
                     stride=STRIDE, pad=get_padding(KSIZE, DIL), dilation=DIL)
    # Tolerance reflects bf16 MXU inputs (f32 accumulation) in the conv.
    assert jnp.allclose(out, ref, atol=2e-2, rtol=2e-2), (
        float(jnp.max(jnp.abs(out - ref))))

    print("KERNEL_OK")
</pallas_src>

<mosaic_0001>
module attributes {stable_mosaic.version = 11 : i64} {
  func.func @_downsample_kernel(%arg0: i32, %arg1: i32, %arg2: memref<1x16x80xf32, #tpu.memory_space<vmem>>, %arg3: memref<16x1xf32, #tpu.memory_space<vmem>>, %arg4: memref<16x1xf32, #tpu.memory_space<vmem>>, %arg5: memref<8x144xbf16, #tpu.memory_space<vmem>>, %arg6: memref<8x1xf32, #tpu.memory_space<vmem>>, %arg7: memref<1x8x80xf32, #tpu.memory_space<vmem>>, %arg8: memref<16x336xbf16, #tpu.memory_space<vmem>>, %arg9: memref<144x80xbf16, #tpu.memory_space<vmem>>) attributes {dimension_semantics = [#tpu.dimension_semantics<parallel>, #tpu.dimension_semantics<arbitrary>], iteration_bounds = array<i64: 2, 1>, scalar_prefetch = 0 : i64, scratch_operands = 2 : i64, tpu.core_type = #tpu.core_type<tc>, window_params = [{transform_indices = @transform_0, window_bounds = array<i64: 1, 16, 80>}, {pipeline_mode = #tpu.pipeline_mode<synchronous>, transform_indices = @transform_1, window_bounds = array<i64: 16, 1>}, {pipeline_mode = #tpu.pipeline_mode<synchronous>, transform_indices = @transform_2, window_bounds = array<i64: 16, 1>}, {pipeline_mode = #tpu.pipeline_mode<synchronous>, transform_indices = @transform_3, window_bounds = array<i64: 8, 144>}, {pipeline_mode = #tpu.pipeline_mode<synchronous>, transform_indices = @transform_4, window_bounds = array<i64: 8, 1>}, {transform_indices = @transform_5, window_bounds = array<i64: 1, 8, 80>}]} {
    %c0_i32 = arith.constant 0 : i32
    %0 = arith.cmpi eq, %arg1, %c0_i32 : i32
    %1 = arith.extui %0 : i1 to i32
    %c0_i32_0 = arith.constant 0 : i32
    %2 = arith.cmpi ne, %1, %c0_i32_0 : i32
    scf.if %2 {
      %c0_9 = arith.constant 0 : index
      %c0_10 = arith.constant 0 : index
      %c0_11 = arith.constant 0 : index
      %12 = vector.load %arg2[%c0_9, %c0_10, %c0_11] : memref<1x16x80xf32, #tpu.memory_space<vmem>>, vector<1x16x80xf32>
      %13 = vector.shape_cast %12 : vector<1x16x80xf32> to vector<16x80xf32>
      %c0_12 = arith.constant 0 : index
      %c0_13 = arith.constant 0 : index
      %14 = vector.load %arg3[%c0_12, %c0_13] : memref<16x1xf32, #tpu.memory_space<vmem>>, vector<16x1xf32>
      %15 = vector.broadcast %14 : vector<16x1xf32> to vector<16x80xf32>
      %16 = arith.mulf %13, %15 : vector<16x80xf32>
      %c0_14 = arith.constant 0 : index
      %c0_15 = arith.constant 0 : index
      %17 = vector.load %arg4[%c0_14, %c0_15] : memref<16x1xf32, #tpu.memory_space<vmem>>, vector<16x1xf32>
      %18 = vector.broadcast %17 : vector<16x1xf32> to vector<16x80xf32>
      %19 = arith.addf %16, %18 : vector<16x80xf32>
      %cst_16 = arith.constant 0.000000e+00 : f32
      %20 = vector.broadcast %cst_16 : f32 to vector<16x80xf32>
      %21 = arith.maximumf %19, %20 : vector<16x80xf32>
      %22 = tpu.iota {dimensions = array<i32: 1>} : vector<1x80xi32>
      %c10_i32 = arith.constant 10 : i32
      %c0_i32_17 = arith.constant 0 : i32
      %23 = arith.cmpi eq, %c10_i32, %c0_i32_17 : i32
      %c1_i32 = arith.constant 1 : i32
      %24 = arith.select %23, %c1_i32, %c10_i32 : i32
      %25 = vector.broadcast %24 : i32 to vector<1x80xi32>
      %26 = arith.remsi %22, %25 : vector<1x80xi32>
      %c0_i32_18 = arith.constant 0 : i32
      %27 = vector.broadcast %c0_i32_18 : i32 to vector<1x80xi32>
      %28 = arith.cmpi ne, %26, %27 : vector<1x80xi32>
      %c0_i32_19 = arith.constant 0 : i32
      %29 = vector.broadcast %c0_i32_19 : i32 to vector<1x80xi32>
      %30 = arith.cmpi slt, %26, %29 : vector<1x80xi32>
      %c0_i32_20 = arith.constant 0 : i32
      %31 = arith.cmpi slt, %24, %c0_i32_20 : i32
      %32 = vector.broadcast %31 : i1 to vector<1x80xi1>
      %33 = vector.broadcast %32 : vector<1x80xi1> to vector<1x80xi1>
      %34 = arith.xori %30, %33 : vector<1x80xi1>
      %35 = arith.andi %34, %28 : vector<1x80xi1>
      %36 = vector.broadcast %24 : i32 to vector<1x80xi32>
      %37 = arith.addi %26, %36 : vector<1x80xi32>
      %38 = arith.select %35, %37, %26 : vector<1x80xi1>, vector<1x80xi32>
      %c8_i32 = arith.constant 8 : i32
      %39 = vector.broadcast %c8_i32 : i32 to vector<1x80xi32>
      %40 = arith.cmpi slt, %38, %39 : vector<1x80xi32>
      %cst_21 = arith.constant 0.000000e+00 : f32
      %41 = vector.shape_cast %40 : vector<1x80xi1> to vector<1x80xi1>
      %42 = vector.broadcast %41 : vector<1x80xi1> to vector<16x80xi1>
      %43 = vector.broadcast %cst_21 : f32 to vector<16x80xf32>
      %44 = arith.select %42, %21, %43 : vector<16x80xi1>, vector<16x80xf32>
      %45 = arith.truncf %44 : vector<16x80xf32> to vector<16x80xbf16>
      %c0_22 = arith.constant 0 : index
      %c128 = arith.constant 128 : index
      %46 = vector.load %arg8[%c0_22, %c128] : memref<16x336xbf16, #tpu.memory_space<vmem>>, vector<16x80xbf16>
      tpu.vector_store %arg8[%c0_22, %c128], %45 {strides = array<i32>} : memref<16x336xbf16, #tpu.memory_space<vmem>>, vector<16x80xbf16>,
      %cst_23 = arith.constant 0.000000e+00 : bf16
      %47 = vector.broadcast %cst_23 : bf16 to vector<16x128xbf16>
      %c0_24 = arith.constant 0 : index
      %c0_25 = arith.constant 0 : index
      %48 = vector.load %arg8[%c0_24, %c0_25] : memref<16x336xbf16, #tpu.memory_space<vmem>>, vector<16x128xbf16>
      tpu.vector_store %arg8[%c0_24, %c0_25], %47 {strides = array<i32>} : memref<16x336xbf16, #tpu.memory_space<vmem>>, vector<16x128xbf16>,
      %c0_26 = arith.constant 0 : index
      %c208 = arith.constant 208 : index
      %49 = vector.load %arg8[%c0_26, %c208] : memref<16x336xbf16, #tpu.memory_space<vmem>>, vector<16x128xbf16>
      tpu.vector_store %arg8[%c0_26, %c208], %47 {strides = array<i32>} : memref<16x336xbf16, #tpu.memory_space<vmem>>, vector<16x128xbf16>,
      %c0_27 = arith.constant 0 : index
      %c117 = arith.constant 117 : index
      %50 = vector.load %arg8[%c0_27, %c117] : memref<16x336xbf16, #tpu.memory_space<vmem>>, vector<16x80xbf16>
      %c0_28 = arith.constant 0 : index
      %c0_29 = arith.constant 0 : index
      %51 = vector.load %arg9[%c0_28, %c0_29] : memref<144x80xbf16, #tpu.memory_space<vmem>>, vector<16x80xbf16>
      tpu.vector_store %arg9[%c0_28, %c0_29], %50 {strides = array<i32>} : memref<144x80xbf16, #tpu.memory_space<vmem>>, vector<16x80xbf16>,
      %c0_30 = arith.constant 0 : index
      %c118 = arith.constant 118 : index
      %52 = vector.load %arg8[%c0_30, %c118] : memref<16x336xbf16, #tpu.memory_space<vmem>>, vector<16x80xbf16>
      %c16 = arith.constant 16 : index
      %c0_31 = arith.constant 0 : index
      %53 = vector.load %arg9[%c16, %c0_31] : memref<144x80xbf16, #tpu.memory_space<vmem>>, vector<16x80xbf16>
      tpu.vector_store %arg9[%c16, %c0_31], %52 {strides = array<i32>} : memref<144x80xbf16, #tpu.memory_space<vmem>>, vector<16x80xbf16>,
      %c0_32 = arith.constant 0 : index
      %c119 = arith.constant 119 : index
      %54 = vector.load %arg8[%c0_32, %c119] : memref<16x336xbf16, #tpu.memory_space<vmem>>, vector<16x80xbf16>
      %c32 = arith.constant 32 : index
      %c0_33 = arith.constant 0 : index
      %55 = vector.load %arg9[%c32, %c0_33] : memref<144x80xbf16, #tpu.memory_space<vmem>>, vector<16x80xbf16>
      tpu.vector_store %arg9[%c32, %c0_33], %54 {strides = array<i32>} : memref<144x80xbf16, #tpu.memory_space<vmem>>, vector<16x80xbf16>,
      %c0_34 = arith.constant 0 : index
      %c127 = arith.constant 127 : index
      %56 = vector.load %arg8[%c0_34, %c127] : memref<16x336xbf16, #tpu.memory_space<vmem>>, vector<16x80xbf16>
      %c48 = arith.constant 48 : index
      %c0_35 = arith.constant 0 : index
      %57 = vector.load %arg9[%c48, %c0_35] : memref<144x80xbf16, #tpu.memory_space<vmem>>, vector<16x80xbf16>
      tpu.vector_store %arg9[%c48, %c0_35], %56 {strides = array<i32>} : memref<144x80xbf16, #tpu.memory_space<vmem>>, vector<16x80xbf16>,
      %c0_36 = arith.constant 0 : index
      %c128_37 = arith.constant 128 : index
      %58 = vector.load %arg8[%c0_36, %c128_37] : memref<16x336xbf16, #tpu.memory_space<vmem>>, vector<16x80xbf16>
      %c64 = arith.constant 64 : index
      %c0_38 = arith.constant 0 : index
      %59 = vector.load %arg9[%c64, %c0_38] : memref<144x80xbf16, #tpu.memory_space<vmem>>, vector<16x80xbf16>
      tpu.vector_store %arg9[%c64, %c0_38], %58 {strides = array<i32>} : memref<144x80xbf16, #tpu.memory_space<vmem>>, vector<16x80xbf16>,
      %c0_39 = arith.constant 0 : index
      %c129 = arith.constant 129 : index
      %60 = vector.load %arg8[%c0_39, %c129] : memref<16x336xbf16, #tpu.memory_space<vmem>>, vector<16x80xbf16>
      %c80 = arith.constant 80 : index
      %c0_40 = arith.constant 0 : index
      %61 = vector.load %arg9[%c80, %c0_40] : memref<144x80xbf16, #tpu.memory_space<vmem>>, vector<16x80xbf16>
      tpu.vector_store %arg9[%c80, %c0_40], %60 {strides = array<i32>} : memref<144x80xbf16, #tpu.memory_space<vmem>>, vector<16x80xbf16>,
      %c0_41 = arith.constant 0 : index
      %c137 = arith.constant 137 : index
      %62 = vector.load %arg8[%c0_41, %c137] : memref<16x336xbf16, #tpu.memory_space<vmem>>, vector<16x80xbf16>
      %c96 = arith.constant 96 : index
      %c0_42 = arith.constant 0 : index
      %63 = vector.load %arg9[%c96, %c0_42] : memref<144x80xbf16, #tpu.memory_space<vmem>>, vector<16x80xbf16>
      tpu.vector_store %arg9[%c96, %c0_42], %62 {strides = array<i32>} : memref<144x80xbf16, #tpu.memory_space<vmem>>, vector<16x80xbf16>,
      %c0_43 = arith.constant 0 : index
      %c138 = arith.constant 138 : index
      %64 = vector.load %arg8[%c0_43, %c138] : memref<16x336xbf16, #tpu.memory_space<vmem>>, vector<16x80xbf16>
      %c112 = arith.constant 112 : index
      %c0_44 = arith.constant 0 : index
      %65 = vector.load %arg9[%c112, %c0_44] : memref<144x80xbf16, #tpu.memory_space<vmem>>, vector<16x80xbf16>
      tpu.vector_store %arg9[%c112, %c0_44], %64 {strides = array<i32>} : memref<144x80xbf16, #tpu.memory_space<vmem>>, vector<16x80xbf16>,
      %c0_45 = arith.constant 0 : index
      %c139 = arith.constant 139 : index
      %66 = vector.load %arg8[%c0_45, %c139] : memref<16x336xbf16, #tpu.memory_space<vmem>>, vector<16x80xbf16>
      %c128_46 = arith.constant 128 : index
      %c0_47 = arith.constant 0 : index
      %67 = vector.load %arg9[%c128_46, %c0_47] : memref<144x80xbf16, #tpu.memory_space<vmem>>, vector<16x80xbf16>
      tpu.vector_store %arg9[%c128_46, %c0_47], %66 {strides = array<i32>} : memref<144x80xbf16, #tpu.memory_space<vmem>>, vector<16x80xbf16>,
    } else {
    }
    %c0 = arith.constant 0 : index
    %c0_1 = arith.constant 0 : index
    %3 = vector.load %arg5[%c0, %c0_1] : memref<8x144xbf16, #tpu.memory_space<vmem>>, vector<8x144xbf16>
    %c0_2 = arith.constant 0 : index
    %c0_3 = arith.constant 0 : index
    %4 = vector.load %arg9[%c0_2, %c0_3] : memref<144x80xbf16, #tpu.memory_space<vmem>>, vector<144x80xbf16>
    %cst = arith.constant dense<0.000000e+00> : vector<8x80xf32>
    %5 = tpu.matmul %3, %4, %cst {dimension_numbers = #tpu.dot_dimension_numbers<[1], [0], [0], [1], [0, 0, 1, 1], [], []>} : vector<8x144xbf16>, vector<144x80xbf16>, vector<8x80xf32> -> vector<8x80xf32>
    %c0_4 = arith.constant 0 : index
    %c0_5 = arith.constant 0 : index
    %6 = vector.load %arg6[%c0_4, %c0_5] : memref<8x1xf32, #tpu.memory_space<vmem>>, vector<8x1xf32>
    %7 = vector.broadcast %6 : vector<8x1xf32> to vector<8x80xf32>
    %8 = arith.addf %5, %7 : vector<8x80xf32>
    %c0_6 = arith.constant 0 : index
    %c0_7 = arith.constant 0 : index
    %c0_8 = arith.constant 0 : index
    %9 = vector.load %arg7[%c0_6, %c0_7, %c0_8] : memref<1x8x80xf32, #tpu.memory_space<vmem>>, vector<1x8x80xf32>
    %10 = vector.shape_cast %9 : vector<1x8x80xf32> to vector<8x80xf32>
    %11 = vector.shape_cast %8 : vector<8x80xf32> to vector<1x8x80xf32>
    tpu.vector_store %arg7[%c0_6, %c0_7, %c0_8], %11 {strides = array<i32>} : memref<1x8x80xf32, #tpu.memory_space<vmem>>, vector<1x8x80xf32>,
    return
  }
  func.func @transform_0(%arg0: i32, %arg1: i32) -> (i32, i32, i32) {
    %c0_i32 = arith.constant 0 : i32
    %c0_i32_0 = arith.constant 0 : i32
    %c0_i32_1 = arith.constant 0 : i32
    return %arg0, %c0_i32, %c0_i32_0 : i32, i32, i32
  }
  func.func @transform_1(%arg0: i32, %arg1: i32) -> (i32, i32) {
    %c0_i32 = arith.constant 0 : i32
    %c0_i32_0 = arith.constant 0 : i32
    %c0_i32_1 = arith.constant 0 : i32
    return %c0_i32, %c0_i32_0 : i32, i32
  }
  func.func @transform_2(%arg0: i32, %arg1: i32) -> (i32, i32) {
    %c0_i32 = arith.constant 0 : i32
    %c0_i32_0 = arith.constant 0 : i32
    %c0_i32_1 = arith.constant 0 : i32
    return %c0_i32, %c0_i32_0 : i32, i32
  }
  func.func @transform_3(%arg0: i32, %arg1: i32) -> (i32, i32) {
    %c0_i32 = arith.constant 0 : i32
    %c0_i32_0 = arith.constant 0 : i32
    return %arg1, %c0_i32 : i32, i32
  }
  func.func @transform_4(%arg0: i32, %arg1: i32) -> (i32, i32) {
    %c0_i32 = arith.constant 0 : i32
    %c0_i32_0 = arith.constant 0 : i32
    return %arg1, %c0_i32 : i32, i32
  }
  func.func @transform_5(%arg0: i32, %arg1: i32) -> (i32, i32, i32) {
    %c0_i32 = arith.constant 0 : i32
    %c0_i32_0 = arith.constant 0 : i32
    return %arg0, %arg1, %c0_i32 : i32, i32, i32
  }
}

module attributes {stable_mosaic.version = 11 : i64} {
  func.func @_downsample_kernel(%arg0: i32, %arg1: i32, %arg2: memref<1x16x80xf32, #tpu.memory_space<vmem>>, %arg3: memref<16x1xf32, #tpu.memory_space<vmem>>, %arg4: memref<16x1xf32, #tpu.memory_space<vmem>>, %arg5: memref<8x144xbf16, #tpu.memory_space<vmem>>, %arg6: memref<8x1xf32, #tpu.memory_space<vmem>>, %arg7: memref<1x8x80xf32, #tpu.memory_space<vmem>>, %arg8: memref<16x336xbf16, #tpu.memory_space<vmem>>, %arg9: memref<144x80xbf16, #tpu.memory_space<vmem>>) attributes {dimension_semantics = [#tpu.dimension_semantics<parallel>, #tpu.dimension_semantics<arbitrary>], iteration_bounds = array<i64: 2, 1>, scalar_prefetch = 0 : i64, scratch_operands = 2 : i64, tpu.core_type = #tpu.core_type<tc>, window_params = [{transform_indices = @transform_0, window_bounds = array<i64: 1, 16, 80>}, {pipeline_mode = #tpu.pipeline_mode<synchronous>, transform_indices = @transform_1, window_bounds = array<i64: 16, 1>}, {pipeline_mode = #tpu.pipeline_mode<synchronous>, transform_indices = @transform_2, window_bounds = array<i64: 16, 1>}, {transform_indices = @transform_3, window_bounds = array<i64: 8, 144>}, {transform_indices = @transform_4, window_bounds = array<i64: 8, 1>}, {transform_indices = @transform_5, window_bounds = array<i64: 1, 8, 80>}]} {
    %c0_i32 = arith.constant 0 : i32
    %0 = arith.cmpi eq, %arg1, %c0_i32 : i32
    %1 = arith.extui %0 : i1 to i32
    %c0_i32_0 = arith.constant 0 : i32
    %2 = arith.cmpi ne, %1, %c0_i32_0 : i32
    scf.if %2 {
      %c0_9 = arith.constant 0 : index
      %c0_10 = arith.constant 0 : index
      %c0_11 = arith.constant 0 : index
      %12 = vector.load %arg2[%c0_9, %c0_10, %c0_11] : memref<1x16x80xf32, #tpu.memory_space<vmem>>, vector<1x16x80xf32>
      %13 = vector.shape_cast %12 : vector<1x16x80xf32> to vector<16x80xf32>
      %c0_12 = arith.constant 0 : index
      %c0_13 = arith.constant 0 : index
      %14 = vector.load %arg3[%c0_12, %c0_13] : memref<16x1xf32, #tpu.memory_space<vmem>>, vector<16x1xf32>
      %15 = vector.broadcast %14 : vector<16x1xf32> to vector<16x80xf32>
      %16 = arith.mulf %13, %15 : vector<16x80xf32>
      %c0_14 = arith.constant 0 : index
      %c0_15 = arith.constant 0 : index
      %17 = vector.load %arg4[%c0_14, %c0_15] : memref<16x1xf32, #tpu.memory_space<vmem>>, vector<16x1xf32>
      %18 = vector.broadcast %17 : vector<16x1xf32> to vector<16x80xf32>
      %19 = arith.addf %16, %18 : vector<16x80xf32>
      %cst_16 = arith.constant 0.000000e+00 : f32
      %20 = vector.broadcast %cst_16 : f32 to vector<16x80xf32>
      %21 = arith.maximumf %19, %20 : vector<16x80xf32>
      %22 = tpu.iota {dimensions = array<i32: 1>} : vector<1x80xi32>
      %c10_i32 = arith.constant 10 : i32
      %c0_i32_17 = arith.constant 0 : i32
      %23 = arith.cmpi eq, %c10_i32, %c0_i32_17 : i32
      %c1_i32 = arith.constant 1 : i32
      %24 = arith.select %23, %c1_i32, %c10_i32 : i32
      %25 = vector.broadcast %24 : i32 to vector<1x80xi32>
      %26 = arith.remsi %22, %25 : vector<1x80xi32>
      %c0_i32_18 = arith.constant 0 : i32
      %27 = vector.broadcast %c0_i32_18 : i32 to vector<1x80xi32>
      %28 = arith.cmpi ne, %26, %27 : vector<1x80xi32>
      %c0_i32_19 = arith.constant 0 : i32
      %29 = vector.broadcast %c0_i32_19 : i32 to vector<1x80xi32>
      %30 = arith.cmpi slt, %26, %29 : vector<1x80xi32>
      %c0_i32_20 = arith.constant 0 : i32
      %31 = arith.cmpi slt, %24, %c0_i32_20 : i32
      %32 = vector.broadcast %31 : i1 to vector<1x80xi1>
      %33 = vector.broadcast %32 : vector<1x80xi1> to vector<1x80xi1>
      %34 = arith.xori %30, %33 : vector<1x80xi1>
      %35 = arith.andi %34, %28 : vector<1x80xi1>
      %36 = vector.broadcast %24 : i32 to vector<1x80xi32>
      %37 = arith.addi %26, %36 : vector<1x80xi32>
      %38 = arith.select %35, %37, %26 : vector<1x80xi1>, vector<1x80xi32>
      %c8_i32 = arith.constant 8 : i32
      %39 = vector.broadcast %c8_i32 : i32 to vector<1x80xi32>
      %40 = arith.cmpi slt, %38, %39 : vector<1x80xi32>
      %cst_21 = arith.constant 0.000000e+00 : f32
      %41 = vector.shape_cast %40 : vector<1x80xi1> to vector<1x80xi1>
      %42 = vector.broadcast %41 : vector<1x80xi1> to vector<16x80xi1>
      %43 = vector.broadcast %cst_21 : f32 to vector<16x80xf32>
      %44 = arith.select %42, %21, %43 : vector<16x80xi1>, vector<16x80xf32>
      %45 = arith.truncf %44 : vector<16x80xf32> to vector<16x80xbf16>
      %c0_22 = arith.constant 0 : index
      %c128 = arith.constant 128 : index
      %46 = vector.load %arg8[%c0_22, %c128] : memref<16x336xbf16, #tpu.memory_space<vmem>>, vector<16x80xbf16>
      tpu.vector_store %arg8[%c0_22, %c128], %45 {strides = array<i32>} : memref<16x336xbf16, #tpu.memory_space<vmem>>, vector<16x80xbf16>,
      %cst_23 = arith.constant 0.000000e+00 : bf16
      %47 = vector.broadcast %cst_23 : bf16 to vector<16x128xbf16>
      %c0_24 = arith.constant 0 : index
      %c0_25 = arith.constant 0 : index
      %48 = vector.load %arg8[%c0_24, %c0_25] : memref<16x336xbf16, #tpu.memory_space<vmem>>, vector<16x128xbf16>
      tpu.vector_store %arg8[%c0_24, %c0_25], %47 {strides = array<i32>} : memref<16x336xbf16, #tpu.memory_space<vmem>>, vector<16x128xbf16>,
      %c0_26 = arith.constant 0 : index
      %c208 = arith.constant 208 : index
      %49 = vector.load %arg8[%c0_26, %c208] : memref<16x336xbf16, #tpu.memory_space<vmem>>, vector<16x128xbf16>
      tpu.vector_store %arg8[%c0_26, %c208], %47 {strides = array<i32>} : memref<16x336xbf16, #tpu.memory_space<vmem>>, vector<16x128xbf16>,
      %c0_27 = arith.constant 0 : index
      %c117 = arith.constant 117 : index
      %50 = vector.load %arg8[%c0_27, %c117] : memref<16x336xbf16, #tpu.memory_space<vmem>>, vector<16x80xbf16>
      %c0_28 = arith.constant 0 : index
      %c0_29 = arith.constant 0 : index
      %51 = vector.load %arg9[%c0_28, %c0_29] : memref<144x80xbf16, #tpu.memory_space<vmem>>, vector<16x80xbf16>
      tpu.vector_store %arg9[%c0_28, %c0_29], %50 {strides = array<i32>} : memref<144x80xbf16, #tpu.memory_space<vmem>>, vector<16x80xbf16>,
      %c0_30 = arith.constant 0 : index
      %c118 = arith.constant 118 : index
      %52 = vector.load %arg8[%c0_30, %c118] : memref<16x336xbf16, #tpu.memory_space<vmem>>, vector<16x80xbf16>
      %c16 = arith.constant 16 : index
      %c0_31 = arith.constant 0 : index
      %53 = vector.load %arg9[%c16, %c0_31] : memref<144x80xbf16, #tpu.memory_space<vmem>>, vector<16x80xbf16>
      tpu.vector_store %arg9[%c16, %c0_31], %52 {strides = array<i32>} : memref<144x80xbf16, #tpu.memory_space<vmem>>, vector<16x80xbf16>,
      %c0_32 = arith.constant 0 : index
      %c119 = arith.constant 119 : index
      %54 = vector.load %arg8[%c0_32, %c119] : memref<16x336xbf16, #tpu.memory_space<vmem>>, vector<16x80xbf16>
      %c32 = arith.constant 32 : index
      %c0_33 = arith.constant 0 : index
      %55 = vector.load %arg9[%c32, %c0_33] : memref<144x80xbf16, #tpu.memory_space<vmem>>, vector<16x80xbf16>
      tpu.vector_store %arg9[%c32, %c0_33], %54 {strides = array<i32>} : memref<144x80xbf16, #tpu.memory_space<vmem>>, vector<16x80xbf16>,
      %c0_34 = arith.constant 0 : index
      %c127 = arith.constant 127 : index
      %56 = vector.load %arg8[%c0_34, %c127] : memref<16x336xbf16, #tpu.memory_space<vmem>>, vector<16x80xbf16>
      %c48 = arith.constant 48 : index
      %c0_35 = arith.constant 0 : index
      %57 = vector.load %arg9[%c48, %c0_35] : memref<144x80xbf16, #tpu.memory_space<vmem>>, vector<16x80xbf16>
      tpu.vector_store %arg9[%c48, %c0_35], %56 {strides = array<i32>} : memref<144x80xbf16, #tpu.memory_space<vmem>>, vector<16x80xbf16>,
      %c0_36 = arith.constant 0 : index
      %c128_37 = arith.constant 128 : index
      %58 = vector.load %arg8[%c0_36, %c128_37] : memref<16x336xbf16, #tpu.memory_space<vmem>>, vector<16x80xbf16>
      %c64 = arith.constant 64 : index
      %c0_38 = arith.constant 0 : index
      %59 = vector.load %arg9[%c64, %c0_38] : memref<144x80xbf16, #tpu.memory_space<vmem>>, vector<16x80xbf16>
      tpu.vector_store %arg9[%c64, %c0_38], %58 {strides = array<i32>} : memref<144x80xbf16, #tpu.memory_space<vmem>>, vector<16x80xbf16>,
      %c0_39 = arith.constant 0 : index
      %c129 = arith.constant 129 : index
      %60 = vector.load %arg8[%c0_39, %c129] : memref<16x336xbf16, #tpu.memory_space<vmem>>, vector<16x80xbf16>
      %c80 = arith.constant 80 : index
      %c0_40 = arith.constant 0 : index
      %61 = vector.load %arg9[%c80, %c0_40] : memref<144x80xbf16, #tpu.memory_space<vmem>>, vector<16x80xbf16>
      tpu.vector_store %arg9[%c80, %c0_40], %60 {strides = array<i32>} : memref<144x80xbf16, #tpu.memory_space<vmem>>, vector<16x80xbf16>,
      %c0_41 = arith.constant 0 : index
      %c137 = arith.constant 137 : index
      %62 = vector.load %arg8[%c0_41, %c137] : memref<16x336xbf16, #tpu.memory_space<vmem>>, vector<16x80xbf16>
      %c96 = arith.constant 96 : index
      %c0_42 = arith.constant 0 : index
      %63 = vector.load %arg9[%c96, %c0_42] : memref<144x80xbf16, #tpu.memory_space<vmem>>, vector<16x80xbf16>
      tpu.vector_store %arg9[%c96, %c0_42], %62 {strides = array<i32>} : memref<144x80xbf16, #tpu.memory_space<vmem>>, vector<16x80xbf16>,
      %c0_43 = arith.constant 0 : index
      %c138 = arith.constant 138 : index
      %64 = vector.load %arg8[%c0_43, %c138] : memref<16x336xbf16, #tpu.memory_space<vmem>>, vector<16x80xbf16>
      %c112 = arith.constant 112 : index
      %c0_44 = arith.constant 0 : index
      %65 = vector.load %arg9[%c112, %c0_44] : memref<144x80xbf16, #tpu.memory_space<vmem>>, vector<16x80xbf16>
      tpu.vector_store %arg9[%c112, %c0_44], %64 {strides = array<i32>} : memref<144x80xbf16, #tpu.memory_space<vmem>>, vector<16x80xbf16>,
      %c0_45 = arith.constant 0 : index
      %c139 = arith.constant 139 : index
      %66 = vector.load %arg8[%c0_45, %c139] : memref<16x336xbf16, #tpu.memory_space<vmem>>, vector<16x80xbf16>
      %c128_46 = arith.constant 128 : index
      %c0_47 = arith.constant 0 : index
      %67 = vector.load %arg9[%c128_46, %c0_47] : memref<144x80xbf16, #tpu.memory_space<vmem>>, vector<16x80xbf16>
      tpu.vector_store %arg9[%c128_46, %c0_47], %66 {strides = array<i32>} : memref<144x80xbf16, #tpu.memory_space<vmem>>, vector<16x80xbf16>,
    } else {
    }
    %c0 = arith.constant 0 : index
    %c0_1 = arith.constant 0 : index
    %3 = vector.load %arg5[%c0, %c0_1] : memref<8x144xbf16, #tpu.memory_space<vmem>>, vector<8x144xbf16>
    %c0_2 = arith.constant 0 : index
    %c0_3 = arith.constant 0 : index
    %4 = vector.load %arg9[%c0_2, %c0_3] : memref<144x80xbf16, #tpu.memory_space<vmem>>, vector<144x80xbf16>
    %cst = arith.constant dense<0.000000e+00> : vector<8x80xf32>
    %5 = tpu.matmul %3, %4, %cst {dimension_numbers = #tpu.dot_dimension_numbers<[1], [0], [0], [1], [0, 0, 1, 1], [], []>} : vector<8x144xbf16>, vector<144x80xbf16>, vector<8x80xf32> -> vector<8x80xf32>
    %c0_4 = arith.constant 0 : index
    %c0_5 = arith.constant 0 : index
    %6 = vector.load %arg6[%c0_4, %c0_5] : memref<8x1xf32, #tpu.memory_space<vmem>>, vector<8x1xf32>
    %7 = vector.broadcast %6 : vector<8x1xf32> to vector<8x80xf32>
    %8 = arith.addf %5, %7 : vector<8x80xf32>
    %c0_6 = arith.constant 0 : index
    %c0_7 = arith.constant 0 : index
    %c0_8 = arith.constant 0 : index
    %9 = vector.load %arg7[%c0_6, %c0_7, %c0_8] : memref<1x8x80xf32, #tpu.memory_space<vmem>>, vector<1x8x80xf32>
    %10 = vector.shape_cast %9 : vector<1x8x80xf32> to vector<8x80xf32>
    %11 = vector.shape_cast %8 : vector<8x80xf32> to vector<1x8x80xf32>
    tpu.vector_store %arg7[%c0_6, %c0_7, %c0_8], %11 {strides = array<i32>} : memref<1x8x80xf32, #tpu.memory_space<vmem>>, vector<1x8x80xf32>,
    return
  }
  func.func @transform_0(%arg0: i32, %arg1: i32) -> (i32, i32, i32) {
    %c0_i32 = arith.constant 0 : i32
    %c0_i32_0 = arith.constant 0 : i32
    %c0_i32_1 = arith.constant 0 : i32
    return %arg0, %c0_i32, %c0_i32_0 : i32, i32, i32
  }
  func.func @transform_1(%arg0: i32, %arg1: i32) -> (i32, i32) {
    %c0_i32 = arith.constant 0 : i32
    %c0_i32_0 = arith.constant 0 : i32
    %c0_i32_1 = arith.constant 0 : i32
    return %c0_i32, %c0_i32_0 : i32, i32
  }
  func.func @transform_2(%arg0: i32, %arg1: i32) -> (i32, i32) {
    %c0_i32 = arith.constant 0 : i32
    %c0_i32_0 = arith.constant 0 : i32
    %c0_i32_1 = arith.constant 0 : i32
    return %c0_i32, %c0_i32_0 : i32, i32
  }
  func.func @transform_3(%arg0: i32, %arg1: i32) -> (i32, i32) {
    %c0_i32 = arith.constant 0 : i32
    %c0_i32_0 = arith.constant 0 : i32
    return %arg1, %c0_i32 : i32, i32
  }
  func.func @transform_4(%arg0: i32, %arg1: i32) -> (i32, i32) {
    %c0_i32 = arith.constant 0 : i32
    %c0_i32_0 = arith.constant 0 : i32
    return %arg1, %c0_i32 : i32, i32
  }
  func.func @transform_5(%arg0: i32, %arg1: i32) -> (i32, i32, i32) {
    %c0_i32 = arith.constant 0 : i32
    %c0_i32_0 = arith.constant 0 : i32
    return %arg0, %arg1, %c0_i32 : i32, i32, i32
  }
}

</mosaic_0001>

<bundles_post_ra>
// kernel: tpu_custom_call.1
= control target key start
LH: loop header
LB: loop body
LE: loop exit
PB: predicated region body
PF: predicated region fallthrough
CT: control target
= control target key end

     0   :  { %10 = vsyncpa [#allocation5], 0  ;;  %s973_s0 = inlined_call_operand.vmem [shape: f32[2,16,80], index: 0, kind: input, shape index: {}]   ;;  %s974_s1 = inlined_call_operand.vmem [shape: f32[16,1], index: 1, kind: input, shape index: {}]   ;;  %s975_s2 = inlined_call_operand.vmem [shape: f32[16,1], index: 2, kind: input, shape index: {}]   ;;  %s976_s3 = inlined_call_operand.vmem [shape: bf16[8,144], index: 3, kind: input, shape index: {}]   ;;  %s977_s4 = inlined_call_operand.vmem [shape: f32[8,1], index: 4, kind: input, shape index: {}]   ;;  %s978_s5 = inlined_call_operand.hbm [shape: f32[2,8,80], index: 5, kind: output, shape index: {}]  }
   0x1   :  { %12 = vsyncpa [#allocation5 + $0x1], 0  ;;  %s804_s18 = smov 0   ;;  %s806_s19 = smov 0  }
   0x2   :  { %s808_s20 = smov 0   ;;  %s810_s21 = smov 0  }
   0x3   :  { %s812_s22 = smov 0   ;;  %s814_s23 = smov 0  }
   0x4 LB: > { %s596_s24 = sadd.s32 4294967295, %s762_s23   ;;  %s597_s25 = sadd.s32 4294967294, %s762_s23   ;;  %s762_s23 = sphi %s814_s23, %s18_s23   ;;  %s758_s22 = sphi %s812_s22, %s985_s22   ;;  %s754_s21 = sphi %s810_s21, %s984_s21   ;;  %s750_s20 = sphi %s808_s20, %s983_s20   ;;  %s746_s19 = sphi %s806_s19, %s982_s19   ;;  %s742_s18 = sphi %s804_s18, %s981_s18  }
   0x5   : > { %s30_s26 = sadd.s32 1, %s758_s22  ;;  %s159_s27 = sadd.s32 1, %s750_s20 }
   0x6   : > { %p32_p0 = scmp.ge.s32.totalorder %s30_s26, 2  ;;  %p169_p1 = scmp.ne.s32.totalorder %s750_s20, %s746_s19 }
   0x7   : > { %p170_p2 = scmp.eq.s32.totalorder %s596_s24, 1  ;;  %p175_p3 = scmp.ne.s32.totalorder %s746_s19, %s742_s18 }
   0x8   : > { %s987_s26 = smov (%p32_p0, %s30_s26), 0  ;;  %p176_p5 = scmp.eq.s32.totalorder %s597_s25, 1 }
   0x9   : > { %p844_p4 = por %p170_p2, %p169_p1  ;;  %s154_s29 = ssub.s32 %s758_s22, %s987_s26 }
   0xa   : > { %p602_p6 = scmp.ge.s32.totalorder %s762_s23, 1  ;;  %p157_p7 = scmp.eq.s32.totalorder %s154_s29, 0 }
   0xb   : > { %p851_p8 = por %p176_p5, %p175_p3  ;;  %p223_p9 = scmp.lt.s32.totalorder %s762_s23, 3 }
   0xc   : > { %s857_s6 = scalar_select %p157_p7, %s750_s20, %s159_s27  }
   0xd   : > { %p224_p10 = pnand %p602_p6, %p223_p9 }
   0xe   : > { %v295_v0 = vld [vmem:[%s975_s2] sm:$0xff] (!%p224_p10)  ;;  %v764_v2 = vmov (!%p224_p10), 0   ;;  %v296_v3 = vld [vmem:[%s975_s2 + $0x8] sm:$0xff] (!%p224_p10)  ;;  %vm335_vm0 = vcmask (!%p224_p10), 654336   ;;  %s765_s15 = smov (!%p224_p10), 11   ;;  %s766_s16 = smov (!%p224_p10), 10   ;;  %v311_v5 = vlaneseq (!%p224_p10) }
   0xf   : > { %227 = sbr.rel (%p224_p10) target bundleno = 553 (0x229), region = 40  ;;  %v281_v1 = vld [vmem:[%s974_s1] sm:$0xff] (!%p224_p10)  ;;  %681 = vset.pattern.permute.xlu1 (!%p224_p10), %v764_v2  ;;  %680 = vset.pattern.permute.xlu0 (!%p224_p10), %v764_v2  ;;  %v282_v4 = vld [vmem:[%s974_s1 + $0x8] sm:$0xff] (!%p224_p10)  ;;  %s767_s17 = smov (!%p224_p10), 9   ;;  %vm338_vm5 = vcmask (!%p224_p10), 1048192   ;;  %vm437_vm6 = vcmask (!%p224_p10), 130048  }
  0x10   : > { %299 = vperm.xlu1 (!%p224_p10), %681, %v295_v0   ;;  %285 = vperm.xlu0 (!%p224_p10), %680, %v281_v1   ;;  %s768_s24 = smov (!%p224_p10), 1   ;;  %v312_v6 = vand.u32 (!%p224_p10), 127, %v311_v5  ;;  %p260_p11 = scmp.lt.s32.totalorder (!%p224_p10), %s754_s21, 1  ;;  %v425_v30 = vld [vmem:[%s977_s4] sm:$0xff] (!%p224_p10)  ;;  %vm349_vm7 = vcmask (!%p224_p10), 89088   ;;  %vm361_vm8 = vcmask (!%p224_p10), 80896  }
  0x11   : > { %441 = vmatprep.subr.bf16.mxu0 (!%p224_p10), %v764_v2  ;;  %s769_s9 = smov (!%p224_p10), 127   ;;  %s770_s10 = smov (!%p224_p10), 118   ;;  %v415_v31 = vld [vmem:[%s976_s3] sm:$0xff] (!%p224_p10)  ;;  %vm373_vm9 = vcmask (!%p224_p10), 72704   ;;  %vm385_vm10 = vcmask (!%p224_p10), 7168  }
  0x12   : > { %v882_v7 = vmul.u32.u64.low (!%p224_p10), 3435973837, %v312_v6  ;;  %v883_v8 = vmul.u32.u64.high 3435973837, %v312_v6, %v882_v7  ;;  %s771_s13 = smov (!%p224_p10), 119   ;;  %s772_s14 = smov (!%p224_p10), 117   ;;  %v607_v32 = vcombine.high (!%p224_p10), %v415_v31, %v415_v31  ;;  %v606_v58 = vcombine.low (!%p224_p10), %v415_v31, %v415_v31 }
  0x13   : > { %s773_s11 = smov (!%p224_p10), [#allocation4]  }
  0x14   : > { %304 = vperm.xlu1 (!%p224_p10), %681, %v296_v3   ;;  %290 = vperm.xlu0 (!%p224_p10), %680, %v282_v4   ;;  %v319_v9 = vshrl.u32 (!%p224_p10), %v883_v8, 3  ;;  %s688_s12 = sshll.u32 (!%p224_p10), %s773_s11, 4  ;;  %s689_s12 = int_to_ptr.vmem [resolvable:$false] %s688_s12 }
  0x15   : > { %608 = vmatprep.mubr.msk.bf16.mxu0 (!%p224_p10), %vm437_vm6, %v607_v32 }
  0x16   : > { %s261_s25 = scalar_select %p260_p11, %s754_s21, 1  ;;  %v320_v10 = vmul.u32 10, %v319_v9 }
  0x18   : > { %345 = vrot.lane.b32.xlu0 %v764_v2, %s765_s15  ;;  %s613_s27 = sshll.u32 %s261_s25, 4  ;;  %v321_v11 = vsub.s32 %v312_v6, %v320_v10 }
  0x19   : > { %s264_s8 = scalar_lea.vmem %s973_s0, %s613_s27 }
  0x1a   : > { %v279_v12 = vld [vmem:[%s264_s8] sm:$0xff]  ;;  %vm324_vm1 = vcmp.ne.s32.totalorder %v321_v11, 0  ;;  %vm325_vm2 = vcmp.lt.s32.totalorder %v321_v11, 0  ;;  %v327_v15 = vadd.s32 10, %v321_v11  ;;  %v280_v17 = vld [vmem:[%s264_s8 + $0x8] sm:$0xff] }
  0x1b   : > { %vm326_vm3 = vmand %vm325_vm2, %vm324_vm1 }
  0x1c   : > { %357 = vrot.lane.b32.xlu0 %v764_v2, %s766_s16  ;;  %v328_v20 = vsel %vm326_vm3, %v327_v15, %v321_v11 }
  0x1d   : > { %vm329_vm4 = vcmp.lt.s32.totalorder %v328_v20, 8 }
  0x20   : > { %369 = vrot.lane.b32.xlu0 %v764_v2, %s767_s17 }
  0x24   : > { %381 = vrot.lane.b32.xlu0 %v764_v2, %s768_s24 }
  0x8f   : > { %v300_v13 = vpop.permute.xlu1 %299  ;;  %v286_v14 = vpop.permute.xlu0 %285 }
  0x90   : > { %v293_v16 = vmul.f32 %v286_v14, %v279_v12 }
  0x92   : > { %v307_v18 = vadd.f32 %v300_v13, %v293_v16 }
  0x93   : > { %v291_v19 = vpop.permute.xlu0 %290  ;;  %v305_v22 = vpop.permute.xlu1 %304 }
  0x94   : > { %v294_v21 = vmul.f32 %v291_v19, %v280_v17  ;;  %v309_v23 = vmax.f32 %v307_v18, 0.0 }
  0x96   : > { %v308_v24 = vadd.f32 %v305_v22, %v294_v21  ;;  %v332_v26 = vsel %vm329_vm4, %v309_v23, 0.0 }
  0x97   : > { %v346_v33 = vpop.permute.xlu0 %345 }
  0x98   : > { %v310_v25 = vmax.f32 %v308_v24, 0.0 }
  0x9a   : > { %v333_v27 = vsel %vm329_vm4, %v310_v25, 0.0 }
  0x9b   : > { %v334_v28 = vpack.c.bf16 %v333_v27, %v332_v26  ;;  %v358_v34 = vpop.permute.xlu0 %357 }
  0x9d   : > { %336 = vst.msk [vmem:[#allocation2 + $0x8] sm:$0xff] %vm335_vm0, %v334_v28 }
  0x9e   : > { %339 = vst.msk [vmem:[#allocation2 + $0x8] sm:$0xff] %vm338_vm5, %v764_v2 }
  0x9f   : > { %v370_v35 = vpop.permute.xlu0 %369 }
  0xa3   : > { %v382_v36 = vpop.permute.xlu0 %381 }
  0xa5   : > { %v391_v29 = vld [vmem:[#allocation2 + $0x8] sm:$0xff] }
  0xa6   : > { %393 = vrot.lane.b32.xlu0 %v391_v29, %s769_s9  ;;  %347 = vrot.lane.b32.xlu1 %v391_v29, %s765_s15  ;;  %390 = vst.msk [vmem:[#allocation3 + $0x20] sm:$0xff] %vm335_vm0, %v391_v29 }
  0xaa   : > { %405 = vrot.lane.b32.xlu0 %v391_v29, %s770_s10  ;;  %359 = vrot.lane.b32.xlu1 %v391_v29, %s766_s16  ;;  %s257_s16 = sand.u32 1, %s746_s19  }
  0xad   : > { %v420_v53 = vld [vmem:[#allocation3 + $0x20] sm:$0xff] }
  0xae   : > { %428 = vperm.xlu0 %680, %v425_v30   ;;  %371 = vrot.lane.b32.xlu1 %v391_v29, %s767_s17  ;;  %s603_s17 = sshll.u32 %s257_s16, 3 }
  0xaf   : > { %s259_s27 = scalar_lea.vmem [#allocation4], %s603_s17 }
  0xb0   : > { %s498_s29 = sshll.u32 %s259_s27, 4  ;;  %s927_s29 = int_to_ptr.vmem [resolvable:$true] %s498_s29 }
  0xb1   : > { %s684_s10 = scalar_lea.vmem %s927_s29, 128  ;;  %p691_p1 = scmp.lt.s32.totalorder %s927_s29, %s689_s12 }
  0xb2   : > { %383 = vrot.lane.b32.xlu1 %v391_v29, %s768_s24  ;;  %s610_s24 = sshll.u32 %s754_s21, 7  ;;  %s484_s21 = scalar_lea.sflag [#allocation5], %s257_s16 }
  0xb3   : > { %s925_s9 = scalar_lea.hbm %s978_s5, %s610_s24  ;;  %p685_p12 = scmp.ne.s32.totalorder %s927_s29, %s684_s10 }
  0xb5   : > { %p686_p13 = pnand %p685_p12, %p844_p4 }
  0xb6   : > { %399 = vrot.lane.b32.xlu1 %v391_v29, %s771_s13  ;;  %s690_s13 = scalar_lea.vmem %s689_s12, 256 }
  0xb7   : > { %p687_p0 = pneg %p686_p13  ;;  %p692_p2 = scmp.lt.s32.totalorder %s690_s13, %s684_s10 }
  0xb9   : > { %p693_p3 = por %p692_p2, %p691_p1 }
  0xba   : > { %411 = vrot.lane.b32.xlu1 %v391_v29, %s772_s14 }
  0xbb   : > { %p694_p5 = pnand %p693_p3, %p687_p0 }
 0x118   : > { %v348_v37 = vpop.permute.xlu1 %347  ;;  %v394_v38 = vpop.permute.xlu0 %393 }
 0x119   : > { %v350_v39 = vsel %vm349_vm7, %v346_v33, %v348_v37  ;;  %396 = vst.msk [vmem:[#allocation3 + $0x28] sm:$0xff] %vm335_vm0, %v394_v38 }
 0x11a   : > { %352 = vst.msk [vmem:[#allocation3] sm:$0xff] %vm335_vm0, %v350_v39 }
 0x11c   : > { %v360_v40 = vpop.permute.xlu1 %359  ;;  %v406_v41 = vpop.permute.xlu0 %405 }
 0x11d   : > { %v362_v42 = vsel %vm361_vm8, %v358_v34, %v360_v40  ;;  %408 = vst.msk [vmem:[#allocation3 + $0x38] sm:$0xff] %vm335_vm0, %v406_v41 }
 0x11e   : > { %364 = vst.msk [vmem:[#allocation3 + $0x8] sm:$0xff] %vm335_vm0, %v362_v42 }
 0x120   : > { %v372_v43 = vpop.permute.xlu1 %371  ;;  %v421_v54 = vld [vmem:[#allocation3 + $0x28] sm:$0xff] }
 0x121   : > { %v374_v44 = vsel %vm373_vm9, %v370_v35, %v372_v43  ;;  %v416_v45 = vld [vmem:[#allocation3] sm:$0xff] }
 0x122   : > { %376 = vst.msk [vmem:[#allocation3 + $0x10] sm:$0xff] %vm335_vm0, %v374_v44  ;;  %442 = vmatpush1.bf16.msra.mxu0 %v416_v45 }
 0x123   : > { %443 = vmatprep.subr.bf16.mxu0 %v764_v2 }
 0x124   : > { %v384_v46 = vpop.permute.xlu1 %383  ;;  %v423_v56 = vld [vmem:[#allocation3 + $0x38] sm:$0xff] }
 0x125   : > { %v386_v47 = vsel %vm385_vm10, %v382_v36, %v384_v46  ;;  %v417_v48 = vld [vmem:[#allocation3 + $0x8] sm:$0xff] }
 0x126   : > { %388 = vst.msk [vmem:[#allocation3 + $0x18] sm:$0xff] %vm335_vm0, %v386_v47  ;;  %444 = vmatpush1.bf16.msra.mxu0 %v417_v48 }
 0x127   : > { %445 = vmatprep.subr.bf16.mxu0 %v764_v2 }
 0x128   : > { %v400_v49 = vpop.permute.xlu1 %399 }
 0x129   : > { %v418_v50 = vld [vmem:[#allocation3 + $0x10] sm:$0xff]  ;;  %402 = vst.msk [vmem:[#allocation3 + $0x30] sm:$0xff] %vm335_vm0, %v400_v49 }
 0x12a   : > { %446 = vmatpush1.bf16.msra.mxu0 %v418_v50 }
 0x12b   : > { %447 = vmatprep.subr.bf16.mxu0 %v764_v2 }
 0x12c   : > { %v412_v51 = vpop.permute.xlu1 %411 }
 0x12d   : > { %v419_v52 = vld [vmem:[#allocation3 + $0x18] sm:$0xff]  ;;  %414 = vst.msk [vmem:[#allocation3 + $0x40] sm:$0xff] %vm335_vm0, %v412_v51  ;;  %v429_v59 = vpop.permute.xlu0 %428 }
 0x12e   : > { %448 = vmatpush1.bf16.msra.mxu0 %v419_v52 }
 0x12f   : > { %449 = vmatprep.subr.bf16.mxu0 %v764_v2 }
 0x130   : > { %v422_v55 = vld [vmem:[#allocation3 + $0x30] sm:$0xff] }
 0x132   : > { %450 = vmatpush1.bf16.msra.mxu0 %v420_v53 }
 0x133   : > { %451 = vmatprep.subr.bf16.mxu0 %v764_v2 }
 0x134   : > { %v424_v57 = vld [vmem:[#allocation3 + $0x40] sm:$0xff] }
 0x136   : > { %452 = vmatpush1.bf16.msra.mxu0 %v421_v54 }
 0x137   : > { %453 = vmatprep.subr.bf16.mxu0 %v764_v2 }
 0x13a   : > { %454 = vmatpush1.bf16.msra.mxu0 %v422_v55 }
 0x13b   : > { %455 = vmatprep.subr.bf16.mxu0 %v764_v2 }
 0x13e   : > { %456 = vmatpush1.bf16.msra.mxu0 %v423_v56 }
 0x13f   : > { %457 = vmatprep.subr.bf16.mxu0 %v764_v2 }
 0x142   : > { %458 = vmatpush1.bf16.msra.mxu0 %v424_v57 }
 0x145   : > { %474 = vmatmul.mubr.bf16.vlgmr.msra.gmra.mrb[0].mxu0 %v606_v58 }
 0x218   : > { %v475_v60 = vpop.f32.mrb[0].mxu0 }
 0x219   : > { %v476_v61 = vadd.f32 %v475_v60, %v429_v59  ;;  %v477_v62 = vpop.f32.mrb[1].mxu0 }
 0x21a   : > { %v478_v63 = vpop.f32.mrb[2].mxu0 }
 0x21b   : > { %v479_v0 = vpop.f32.mrb[3].mxu0  ;;  %482 = vst.msk [vmem:[%s259_s27] sm:$0xff] %vm335_vm0, %v476_v61 }
 0x21c   : > { %697 = shalt.err (!%p694_p5)
}
 0x21d   : > { %s698_s14 = scalar_lea.hbm %s925_s9, 128  ;;  %s702_s16 = scalar_lea.hbm %s978_s5, 256 }
 0x21e   : > { %p699_p6 = scmp.ne.s32.totalorder %s925_s9, %s698_s14  ;;  %p703_p10 = scmp.lt.u32.totalorder %s925_s9, %s978_s5 }
 0x21f   : > { %p704_p11 = scmp.lt.u32.totalorder %s702_s16, %s698_s14  ;;  %p706_p13 = scmp.lt.u32.totalorder %s698_s14, %s925_s9 }
 0x220   : > { %p700_p7 = pnand %p699_p6, %p844_p4 }
 0x221   : > { %p705_p12 = por %p704_p11, %p703_p10 }
 0x222   : > { %p701_p9 = pneg %p700_p7 }
 0x223   : > { %p707_p0 = por %p706_p13, %p705_p12 }
 0x225   : > { %p708_p1 = pnand %p707_p0, %p701_p9 }
 0x227   : > { %711 = shalt.err (!%p708_p1)
}
 0x228   : > { %616 = dma.vmem_to_hbm [thread:$0]  (%p844_p4), %s927_s29, 128, %s925_s9, %s484_s21  }
 0x229 PF: > { %p622_p2 = scmp.ge.s32.totalorder %s762_s23, 2  ;;  %s510_s27 = sand.u32 1, %s742_s18  }
 0x22a   : > { %s511_s7 = scalar_lea.sflag [#allocation5], %s510_s27 }
 0x22b   : > { %p619_p3 = pnand %p622_p2, %p851_p8 }
 0x22d   : > { %737 = dma.done.wait (!%p619_p3), %s511_s7, 128  }
 0x22e   : > { %739 = vsyncadd (!%p619_p3), %s511_s7, 4294967168  ;;  %s18_s23 = sadd.s32 1, %s762_s23   ;;  %s981_s18 = smov %s746_s19 }
 0x22f   : > { %p15_p5 = scmp.ge.s32.totalorder %s18_s23, 4   ;;  %s982_s19 = smov %s750_s20 }
 0x230   : > { %s983_s20 = smov %s857_s6  ;;  %s984_s21 = smov %s758_s22 }
 0x231   : > { %s985_s22 = smov %s987_s26  ;;  %17 = sbr.rel (!%p15_p5) target bundleno = 4 (0x4), region = 85 }
 0x238   :  { %516 = vsyncpa [#allocation5], 1 }
 0x239   :  { %518 = vsyncpa [#allocation5 + $0x1], 1 }

// kernel: tpu_custom_call.1
= control target key start
LH: loop header
LB: loop body
LE: loop exit
PB: predicated region body
PF: predicated region fallthrough
CT: control target
= control target key end

     0   :  { %10 = vsyncpa [#allocation5], 0  ;;  %s973_s0 = inlined_call_operand.vmem [shape: f32[2,16,80], index: 0, kind: input, shape index: {}]   ;;  %s974_s1 = inlined_call_operand.vmem [shape: f32[16,1], index: 1, kind: input, shape index: {}]   ;;  %s975_s2 = inlined_call_operand.vmem [shape: f32[16,1], index: 2, kind: input, shape index: {}]   ;;  %s976_s3 = inlined_call_operand.vmem [shape: bf16[8,144], index: 3, kind: input, shape index: {}]   ;;  %s977_s4 = inlined_call_operand.vmem [shape: f32[8,1], index: 4, kind: input, shape index: {}]   ;;  %s978_s5 = inlined_call_operand.hbm [shape: f32[2,8,80], index: 5, kind: output, shape index: {}]  }
   0x1   :  { %12 = vsyncpa [#allocation5 + $0x1], 0  ;;  %s804_s18 = smov 0   ;;  %s806_s19 = smov 0  }
   0x2   :  { %s808_s20 = smov 0   ;;  %s810_s21 = smov 0  }
   0x3   :  { %s812_s22 = smov 0   ;;  %s814_s23 = smov 0  }
   0x4 LB: > { %s596_s24 = sadd.s32 4294967295, %s762_s23   ;;  %s597_s25 = sadd.s32 4294967294, %s762_s23   ;;  %s762_s23 = sphi %s814_s23, %s18_s23   ;;  %s758_s22 = sphi %s812_s22, %s985_s22   ;;  %s754_s21 = sphi %s810_s21, %s984_s21   ;;  %s750_s20 = sphi %s808_s20, %s983_s20   ;;  %s746_s19 = sphi %s806_s19, %s982_s19   ;;  %s742_s18 = sphi %s804_s18, %s981_s18  }
   0x5   : > { %s30_s26 = sadd.s32 1, %s758_s22  ;;  %s159_s27 = sadd.s32 1, %s750_s20 }
   0x6   : > { %p32_p0 = scmp.ge.s32.totalorder %s30_s26, 2  ;;  %p169_p1 = scmp.ne.s32.totalorder %s750_s20, %s746_s19 }
   0x7   : > { %p170_p2 = scmp.eq.s32.totalorder %s596_s24, 1  ;;  %p175_p3 = scmp.ne.s32.totalorder %s746_s19, %s742_s18 }
   0x8   : > { %s987_s26 = smov (%p32_p0, %s30_s26), 0  ;;  %p176_p5 = scmp.eq.s32.totalorder %s597_s25, 1 }
   0x9   : > { %p844_p4 = por %p170_p2, %p169_p1  ;;  %s154_s29 = ssub.s32 %s758_s22, %s987_s26 }
   0xa   : > { %p602_p6 = scmp.ge.s32.totalorder %s762_s23, 1  ;;  %p157_p7 = scmp.eq.s32.totalorder %s154_s29, 0 }
   0xb   : > { %p851_p8 = por %p176_p5, %p175_p3  ;;  %p223_p9 = scmp.lt.s32.totalorder %s762_s23, 3 }
   0xc   : > { %s857_s6 = scalar_select %p157_p7, %s750_s20, %s159_s27  }
   0xd   : > { %p224_p10 = pnand %p602_p6, %p223_p9 }
   0xe   : > { %v295_v0 = vld [vmem:[%s975_s2] sm:$0xff] (!%p224_p10)  ;;  %v764_v2 = vmov (!%p224_p10), 0   ;;  %v296_v3 = vld [vmem:[%s975_s2 + $0x8] sm:$0xff] (!%p224_p10)  ;;  %vm335_vm0 = vcmask (!%p224_p10), 654336   ;;  %s765_s15 = smov (!%p224_p10), 11   ;;  %s766_s16 = smov (!%p224_p10), 10   ;;  %v311_v5 = vlaneseq (!%p224_p10) }
   0xf   : > { %227 = sbr.rel (%p224_p10) target bundleno = 553 (0x229), region = 40  ;;  %v281_v1 = vld [vmem:[%s974_s1] sm:$0xff] (!%p224_p10)  ;;  %681 = vset.pattern.permute.xlu1 (!%p224_p10), %v764_v2  ;;  %680 = vset.pattern.permute.xlu0 (!%p224_p10), %v764_v2  ;;  %v282_v4 = vld [vmem:[%s974_s1 + $0x8] sm:$0xff] (!%p224_p10)  ;;  %s767_s17 = smov (!%p224_p10), 9   ;;  %vm338_vm5 = vcmask (!%p224_p10), 1048192   ;;  %vm437_vm6 = vcmask (!%p224_p10), 130048  }
  0x10   : > { %299 = vperm.xlu1 (!%p224_p10), %681, %v295_v0   ;;  %285 = vperm.xlu0 (!%p224_p10), %680, %v281_v1   ;;  %s768_s24 = smov (!%p224_p10), 1   ;;  %v312_v6 = vand.u32 (!%p224_p10), 127, %v311_v5  ;;  %p260_p11 = scmp.lt.s32.totalorder (!%p224_p10), %s754_s21, 1  ;;  %v425_v30 = vld [vmem:[%s977_s4] sm:$0xff] (!%p224_p10)  ;;  %vm349_vm7 = vcmask (!%p224_p10), 89088   ;;  %vm361_vm8 = vcmask (!%p224_p10), 80896  }
  0x11   : > { %441 = vmatprep.subr.bf16.mxu0 (!%p224_p10), %v764_v2  ;;  %s769_s9 = smov (!%p224_p10), 127   ;;  %s770_s10 = smov (!%p224_p10), 118   ;;  %v415_v31 = vld [vmem:[%s976_s3] sm:$0xff] (!%p224_p10)  ;;  %vm373_vm9 = vcmask (!%p224_p10), 72704   ;;  %vm385_vm10 = vcmask (!%p224_p10), 7168  }
  0x12   : > { %v882_v7 = vmul.u32.u64.low (!%p224_p10), 3435973837, %v312_v6  ;;  %v883_v8 = vmul.u32.u64.high 3435973837, %v312_v6, %v882_v7  ;;  %s771_s13 = smov (!%p224_p10), 119   ;;  %s772_s14 = smov (!%p224_p10), 117   ;;  %v607_v32 = vcombine.high (!%p224_p10), %v415_v31, %v415_v31  ;;  %v606_v58 = vcombine.low (!%p224_p10), %v415_v31, %v415_v31 }
  0x13   : > { %s773_s11 = smov (!%p224_p10), [#allocation4]  }
  0x14   : > { %304 = vperm.xlu1 (!%p224_p10), %681, %v296_v3   ;;  %290 = vperm.xlu0 (!%p224_p10), %680, %v282_v4   ;;  %v319_v9 = vshrl.u32 (!%p224_p10), %v883_v8, 3  ;;  %s688_s12 = sshll.u32 (!%p224_p10), %s773_s11, 4  ;;  %s689_s12 = int_to_ptr.vmem [resolvable:$false] %s688_s12 }
  0x15   : > { %608 = vmatprep.mubr.msk.bf16.mxu0 (!%p224_p10), %vm437_vm6, %v607_v32 }
  0x16   : > { %s261_s25 = scalar_select %p260_p11, %s754_s21, 1  ;;  %v320_v10 = vmul.u32 10, %v319_v9 }
  0x18   : > { %345 = vrot.lane.b32.xlu0 %v764_v2, %s765_s15  ;;  %s613_s27 = sshll.u32 %s261_s25, 4  ;;  %v321_v11 = vsub.s32 %v312_v6, %v320_v10 }
  0x19   : > { %s264_s8 = scalar_lea.vmem %s973_s0, %s613_s27 }
  0x1a   : > { %v279_v12 = vld [vmem:[%s264_s8] sm:$0xff]  ;;  %vm324_vm1 = vcmp.ne.s32.totalorder %v321_v11, 0  ;;  %vm325_vm2 = vcmp.lt.s32.totalorder %v321_v11, 0  ;;  %v327_v15 = vadd.s32 10, %v321_v11  ;;  %v280_v17 = vld [vmem:[%s264_s8 + $0x8] sm:$0xff] }
  0x1b   : > { %vm326_vm3 = vmand %vm325_vm2, %vm324_vm1 }
  0x1c   : > { %357 = vrot.lane.b32.xlu0 %v764_v2, %s766_s16  ;;  %v328_v20 = vsel %vm326_vm3, %v327_v15, %v321_v11 }
  0x1d   : > { %vm329_vm4 = vcmp.lt.s32.totalorder %v328_v20, 8 }
  0x20   : > { %369 = vrot.lane.b32.xlu0 %v764_v2, %s767_s17 }
  0x24   : > { %381 = vrot.lane.b32.xlu0 %v764_v2, %s768_s24 }
  0x8f   : > { %v300_v13 = vpop.permute.xlu1 %299  ;;  %v286_v14 = vpop.permute.xlu0 %285 }
  0x90   : > { %v293_v16 = vmul.f32 %v286_v14, %v279_v12 }
  0x92   : > { %v307_v18 = vadd.f32 %v300_v13, %v293_v16 }
  0x93   : > { %v291_v19 = vpop.permute.xlu0 %290  ;;  %v305_v22 = vpop.permute.xlu1 %304 }
  0x94   : > { %v294_v21 = vmul.f32 %v291_v19, %v280_v17  ;;  %v309_v23 = vmax.f32 %v307_v18, 0.0 }
  0x96   : > { %v308_v24 = vadd.f32 %v305_v22, %v294_v21  ;;  %v332_v26 = vsel %vm329_vm4, %v309_v23, 0.0 }
  0x97   : > { %v346_v33 = vpop.permute.xlu0 %345 }
  0x98   : > { %v310_v25 = vmax.f32 %v308_v24, 0.0 }
  0x9a   : > { %v333_v27 = vsel %vm329_vm4, %v310_v25, 0.0 }
  0x9b   : > { %v334_v28 = vpack.c.bf16 %v333_v27, %v332_v26  ;;  %v358_v34 = vpop.permute.xlu0 %357 }
  0x9d   : > { %336 = vst.msk [vmem:[#allocation2 + $0x8] sm:$0xff] %vm335_vm0, %v334_v28 }
  0x9e   : > { %339 = vst.msk [vmem:[#allocation2 + $0x8] sm:$0xff] %vm338_vm5, %v764_v2 }
  0x9f   : > { %v370_v35 = vpop.permute.xlu0 %369 }
  0xa3   : > { %v382_v36 = vpop.permute.xlu0 %381 }
  0xa5   : > { %v391_v29 = vld [vmem:[#allocation2 + $0x8] sm:$0xff] }
  0xa6   : > { %393 = vrot.lane.b32.xlu0 %v391_v29, %s769_s9  ;;  %347 = vrot.lane.b32.xlu1 %v391_v29, %s765_s15  ;;  %390 = vst.msk [vmem:[#allocation3 + $0x20] sm:$0xff] %vm335_vm0, %v391_v29 }
  0xaa   : > { %405 = vrot.lane.b32.xlu0 %v391_v29, %s770_s10  ;;  %359 = vrot.lane.b32.xlu1 %v391_v29, %s766_s16  ;;  %s257_s16 = sand.u32 1, %s746_s19  }
  0xad   : > { %v420_v53 = vld [vmem:[#allocation3 + $0x20] sm:$0xff] }
  0xae   : > { %428 = vperm.xlu0 %680, %v425_v30   ;;  %371 = vrot.lane.b32.xlu1 %v391_v29, %s767_s17  ;;  %s603_s17 = sshll.u32 %s257_s16, 3 }
  0xaf   : > { %s259_s27 = scalar_lea.vmem [#allocation4], %s603_s17 }
  0xb0   : > { %s498_s29 = sshll.u32 %s259_s27, 4  ;;  %s927_s29 = int_to_ptr.vmem [resolvable:$true] %s498_s29 }
  0xb1   : > { %s684_s10 = scalar_lea.vmem %s927_s29, 128  ;;  %p691_p1 = scmp.lt.s32.totalorder %s927_s29, %s689_s12 }
  0xb2   : > { %383 = vrot.lane.b32.xlu1 %v391_v29, %s768_s24  ;;  %s610_s24 = sshll.u32 %s754_s21, 7  ;;  %s484_s21 = scalar_lea.sflag [#allocation5], %s257_s16 }
  0xb3   : > { %s925_s9 = scalar_lea.hbm %s978_s5, %s610_s24  ;;  %p685_p12 = scmp.ne.s32.totalorder %s927_s29, %s684_s10 }
  0xb5   : > { %p686_p13 = pnand %p685_p12, %p844_p4 }
  0xb6   : > { %399 = vrot.lane.b32.xlu1 %v391_v29, %s771_s13  ;;  %s690_s13 = scalar_lea.vmem %s689_s12, 256 }
  0xb7   : > { %p687_p0 = pneg %p686_p13  ;;  %p692_p2 = scmp.lt.s32.totalorder %s690_s13, %s684_s10 }
  0xb9   : > { %p693_p3 = por %p692_p2, %p691_p1 }
  0xba   : > { %411 = vrot.lane.b32.xlu1 %v391_v29, %s772_s14 }
  0xbb   : > { %p694_p5 = pnand %p693_p3, %p687_p0 }
 0x118   : > { %v348_v37 = vpop.permute.xlu1 %347  ;;  %v394_v38 = vpop.permute.xlu0 %393 }
 0x119   : > { %v350_v39 = vsel %vm349_vm7, %v346_v33, %v348_v37  ;;  %396 = vst.msk [vmem:[#allocation3 + $0x28] sm:$0xff] %vm335_vm0, %v394_v38 }
 0x11a   : > { %352 = vst.msk [vmem:[#allocation3] sm:$0xff] %vm335_vm0, %v350_v39 }
 0x11c   : > { %v360_v40 = vpop.permute.xlu1 %359  ;;  %v406_v41 = vpop.permute.xlu0 %405 }
 0x11d   : > { %v362_v42 = vsel %vm361_vm8, %v358_v34, %v360_v40  ;;  %408 = vst.msk [vmem:[#allocation3 + $0x38] sm:$0xff] %vm335_vm0, %v406_v41 }
 0x11e   : > { %364 = vst.msk [vmem:[#allocation3 + $0x8] sm:$0xff] %vm335_vm0, %v362_v42 }
 0x120   : > { %v372_v43 = vpop.permute.xlu1 %371  ;;  %v421_v54 = vld [vmem:[#allocation3 + $0x28] sm:$0xff] }
 0x121   : > { %v374_v44 = vsel %vm373_vm9, %v370_v35, %v372_v43  ;;  %v416_v45 = vld [vmem:[#allocation3] sm:$0xff] }
 0x122   : > { %376 = vst.msk [vmem:[#allocation3 + $0x10] sm:$0xff] %vm335_vm0, %v374_v44  ;;  %442 = vmatpush1.bf16.msra.mxu0 %v416_v45 }
 0x123   : > { %443 = vmatprep.subr.bf16.mxu0 %v764_v2 }
 0x124   : > { %v384_v46 = vpop.permute.xlu1 %383  ;;  %v423_v56 = vld [vmem:[#allocation3 + $0x38] sm:$0xff] }
 0x125   : > { %v386_v47 = vsel %vm385_vm10, %v382_v36, %v384_v46  ;;  %v417_v48 = vld [vmem:[#allocation3 + $0x8] sm:$0xff] }
 0x126   : > { %388 = vst.msk [vmem:[#allocation3 + $0x18] sm:$0xff] %vm335_vm0, %v386_v47  ;;  %444 = vmatpush1.bf16.msra.mxu0 %v417_v48 }
 0x127   : > { %445 = vmatprep.subr.bf16.mxu0 %v764_v2 }
 0x128   : > { %v400_v49 = vpop.permute.xlu1 %399 }
 0x129   : > { %v418_v50 = vld [vmem:[#allocation3 + $0x10] sm:$0xff]  ;;  %402 = vst.msk [vmem:[#allocation3 + $0x30] sm:$0xff] %vm335_vm0, %v400_v49 }
 0x12a   : > { %446 = vmatpush1.bf16.msra.mxu0 %v418_v50 }
 0x12b   : > { %447 = vmatprep.subr.bf16.mxu0 %v764_v2 }
 0x12c   : > { %v412_v51 = vpop.permute.xlu1 %411 }
 0x12d   : > { %v419_v52 = vld [vmem:[#allocation3 + $0x18] sm:$0xff]  ;;  %414 = vst.msk [vmem:[#allocation3 + $0x40] sm:$0xff] %vm335_vm0, %v412_v51  ;;  %v429_v59 = vpop.permute.xlu0 %428 }
 0x12e   : > { %448 = vmatpush1.bf16.msra.mxu0 %v419_v52 }
 0x12f   : > { %449 = vmatprep.subr.bf16.mxu0 %v764_v2 }
 0x130   : > { %v422_v55 = vld [vmem:[#allocation3 + $0x30] sm:$0xff] }
 0x132   : > { %450 = vmatpush1.bf16.msra.mxu0 %v420_v53 }
 0x133   : > { %451 = vmatprep.subr.bf16.mxu0 %v764_v2 }
 0x134   : > { %v424_v57 = vld [vmem:[#allocation3 + $0x40] sm:$0xff] }
 0x136   : > { %452 = vmatpush1.bf16.msra.mxu0 %v421_v54 }
 0x137   : > { %453 = vmatprep.subr.bf16.mxu0 %v764_v2 }
 0x13a   : > { %454 = vmatpush1.bf16.msra.mxu0 %v422_v55 }
 0x13b   : > { %455 = vmatprep.subr.bf16.mxu0 %v764_v2 }
 0x13e   : > { %456 = vmatpush1.bf16.msra.mxu0 %v423_v56 }
 0x13f   : > { %457 = vmatprep.subr.bf16.mxu0 %v764_v2 }
 0x142   : > { %458 = vmatpush1.bf16.msra.mxu0 %v424_v57 }
 0x145   : > { %474 = vmatmul.mubr.bf16.vlgmr.msra.gmra.mrb[0].mxu0 %v606_v58 }
 0x218   : > { %v475_v60 = vpop.f32.mrb[0].mxu0 }
 0x219   : > { %v476_v61 = vadd.f32 %v475_v60, %v429_v59  ;;  %v477_v62 = vpop.f32.mrb[1].mxu0 }
 0x21a   : > { %v478_v63 = vpop.f32.mrb[2].mxu0 }
 0x21b   : > { %v479_v0 = vpop.f32.mrb[3].mxu0  ;;  %482 = vst.msk [vmem:[%s259_s27] sm:$0xff] %vm335_vm0, %v476_v61 }
 0x21c   : > { %697 = shalt.err (!%p694_p5)
}
 0x21d   : > { %s698_s14 = scalar_lea.hbm %s925_s9, 128  ;;  %s702_s16 = scalar_lea.hbm %s978_s5, 256 }
 0x21e   : > { %p699_p6 = scmp.ne.s32.totalorder %s925_s9, %s698_s14  ;;  %p703_p10 = scmp.lt.u32.totalorder %s925_s9, %s978_s5 }
 0x21f   : > { %p704_p11 = scmp.lt.u32.totalorder %s702_s16, %s698_s14  ;;  %p706_p13 = scmp.lt.u32.totalorder %s698_s14, %s925_s9 }
 0x220   : > { %p700_p7 = pnand %p699_p6, %p844_p4 }
 0x221   : > { %p705_p12 = por %p704_p11, %p703_p10 }
 0x222   : > { %p701_p9 = pneg %p700_p7 }
 0x223   : > { %p707_p0 = por %p706_p13, %p705_p12 }
 0x225   : > { %p708_p1 = pnand %p707_p0, %p701_p9 }
 0x227   : > { %711 = shalt.err (!%p708_p1)
}
 0x228   : > { %616 = dma.vmem_to_hbm [thread:$0]  (%p844_p4), %s927_s29, 128, %s925_s9, %s484_s21  }
 0x229 PF: > { %p622_p2 = scmp.ge.s32.totalorder %s762_s23, 2  ;;  %s510_s27 = sand.u32 1, %s742_s18  }
 0x22a   : > { %s511_s7 = scalar_lea.sflag [#allocation5], %s510_s27 }
 0x22b   : > { %p619_p3 = pnand %p622_p2, %p851_p8 }
 0x22d   : > { %737 = dma.done.wait (!%p619_p3), %s511_s7, 128  }
 0x22e   : > { %739 = vsyncadd (!%p619_p3), %s511_s7, 4294967168  ;;  %s18_s23 = sadd.s32 1, %s762_s23   ;;  %s981_s18 = smov %s746_s19 }
 0x22f   : > { %p15_p5 = scmp.ge.s32.totalorder %s18_s23, 4   ;;  %s982_s19 = smov %s750_s20 }
 0x230   : > { %s983_s20 = smov %s857_s6  ;;  %s984_s21 = smov %s758_s22 }
 0x231   : > { %s985_s22 = smov %s987_s26  ;;  %17 = sbr.rel (!%p15_p5) target bundleno = 4 (0x4), region = 85 }
 0x238   :  { %516 = vsyncpa [#allocation5], 1 }
 0x239   :  { %518 = vsyncpa [#allocation5 + $0x1], 1 }

</bundles_post_ra>
